<compile_context>
chip_gen: v5e
topology: v5e:2x2
jax: 0.10.0
libtpu: 0.0.40
codegen_flags: <defaults>
</compile_context>

<pallas_src>
import functools

import jax
import jax.numpy as jnp
from jax.experimental import pallas as pl
from jax.experimental.pallas import tpu as pltpu


def _round_up(x, m):
    return ((x + m - 1) // m) * m


def _message_kernel(h_ref, a_ref, o_ref, acc_ref, *, normalise, out_dim):
    """One (row-tile i, k-tile) step of out = (A @ H) / deg(A).

    h_ref : (tk, out_dim [+1])  k-slice of H (last column = ones if normalise)
    a_ref : (tm, tk)            A tile (bf16 or f32) -- fed directly to the MXU
    acc   : (tm, out_dim [+1])  f32 accumulator, resident across the k axis
    """
    k = pl.program_id(1)

    @pl.when(k == 0)
    def _init():
        acc_ref[...] = jnp.zeros_like(acc_ref)

    # Single MXU pass: messages and (via the ones column) the degree, accumulated
    # in f32 regardless of the A / H storage dtype.
    acc_ref[...] += jnp.dot(a_ref[...], h_ref[...],
                            preferred_element_type=jnp.float32)

    @pl.when(k == pl.num_programs(1) - 1)
    def _finalize():
        acc = acc_ref[...]
        if normalise:
            msg = acc[:, :out_dim]
            deg = acc[:, out_dim:out_dim + 1]
            # Exact divide: deg==0 (isolated / padded rows) -> 0 / 1e-30 = 0,
            # matching the reference (approx reciprocal of 1e-30 could blow up).
            o_ref[...] = (msg / (deg + 1e-30)).astype(o_ref.dtype)
        else:
            o_ref[...] = acc.astype(o_ref.dtype)


def message_layer(X, W, A, normalise=True, *,
                  tile_rows=512, tile_cols=2048,
                  cast_adjacency_to_bf16=True):
    """X: (N, in_dim) f32, W: (out_dim, in_dim) f32 (PyTorch layout), A: (N, N).

    cast_adjacency_to_bf16 (default True): exact for 0/1 adjacencies and halves
    the dominant HBM traffic on this memory-bound kernel. Set False for weighted
    adjacencies that need full f32 precision (H then also stays f32).
    """
    N, in_dim = X.shape
    out_dim = W.shape[0]
    assert A.shape == (N, N), "A must be a dense (N, N) adjacency"

    # Precompute H = X @ W.T once (N x out_dim, tiny vs the A stream).
    H = jnp.dot(X, W.T, preferred_element_type=jnp.float32)

    compute_dtype = jnp.bfloat16 if cast_adjacency_to_bf16 else jnp.float32

    # Tile sizes: clamp to (padded) N for small graphs; bf16 A packs (16, 128).
    sub = 16 if cast_adjacency_to_bf16 else 8
    tm = min(tile_rows, _round_up(N, sub))
    tk = min(tile_cols, _round_up(N, 128))
    np_rows = _round_up(N, tm)   # padded rows of A / rows of output
    np_cols = _round_up(N, tk)   # padded cols of A / rows of H

    # Zero padding is semantically inert: padded A columns are zero (so the ones
    # column of padded H rows contributes nothing), padded rows are sliced off.
    A_p = A
    if (np_rows, np_cols) != (N, N):
        A_p = jnp.pad(A, ((0, np_rows - N), (0, np_cols - N)))
    A_p = A_p.astype(compute_dtype)

    H_p = H
    if np_cols != N:
        H_p = jnp.pad(H, ((0, np_cols - N), (0, 0)))
    if normalise:
        # Degree rides the same MXU pass: append a ones column to H.
        H_p = jnp.concatenate([H_p, jnp.ones((np_cols, 1), H_p.dtype)], axis=1)
    H_p = H_p.astype(compute_dtype)

    acc_cols = out_dim + 1 if normalise else out_dim
    grid = (np_rows // tm, np_cols // tk)

    kernel = functools.partial(_message_kernel, normalise=normalise,
                               out_dim=out_dim)

    # Cost of the pallas_call only (H precompute is a separate XLA op).
    flops = 2 * N * N * acc_cols
    bytes_accessed = int(A_p.size * A_p.dtype.itemsize
                         + H_p.size * H_p.dtype.itemsize * grid[0]  # H re-streamed per row tile
                         + np_rows * out_dim * 4)
    cost = pl.CostEstimate(flops=flops, transcendentals=0,
                           bytes_accessed=bytes_accessed)

    out = pl.pallas_call(
        kernel,
        out_shape=jax.ShapeDtypeStruct((np_rows, out_dim), jnp.float32),
        grid_spec=pltpu.PrefetchScalarGridSpec(
            num_scalar_prefetch=0,
            grid=grid,                                               # (rows, k) — reduction last
            in_specs=[
                pl.BlockSpec((tk, acc_cols), lambda i, k: (k, 0)),   # H k-slice (+ ones col)
                pl.BlockSpec((tm, tk), lambda i, k: (i, k)),         # A tile (dominant stream)
            ],
            out_specs=pl.BlockSpec((tm, out_dim), lambda i, k: (i, 0)),
            scratch_shapes=[
                pltpu.VMEM((tm, acc_cols), jnp.float32),             # msg + degree accumulator
            ],
        ),
        compiler_params=pltpu.CompilerParams(
            dimension_semantics=("parallel", "arbitrary"),           # rows shard across TCs (v7x)
            vmem_limit_bytes=48 * 1024 * 1024,                       # headroom, < v7x 64 MiB physical
        ),
        cost_estimate=cost,
    )(H_p, A_p)

    return out[:N]


if __name__ == "__main__":
    key = jax.random.PRNGKey(0)
    k_x, k_w, k_a = jax.random.split(key, 3)

    N, in_dim, out_dim = 16, 32, 8

    X = jax.random.normal(k_x, (N, in_dim), dtype=jnp.float32)
    # Deterministic Linear weight init (Kaiming-uniform-like range, fixed seed).
    bound = 1.0 / (in_dim ** 0.5)
    W = jax.random.uniform(k_w, (out_dim, in_dim), minval=-bound, maxval=bound,
                           dtype=jnp.float32)
    # Symmetric 0/1 adjacency with self-loops.
    A = (jax.random.uniform(k_a, (N, N)) > 0.6).astype(jnp.float32)
    A = jnp.maximum(A, A.T)
    A = jnp.maximum(A, jnp.eye(N, dtype=jnp.float32))

    # Pure-JAX references.
    ref_norm = (A @ (X @ W.T)) / (A.sum(-1, keepdims=True) + 1e-30)
    ref_raw = A @ (X @ W.T)

    # 1) normalised, bf16 A + bf16 H fed straight to the MXU (default, fast path).
    #    H in bf16 adds ~1e-3 relative rounding; A / degree stay exact for 0/1 A.
    out1 = jax.block_until_ready(message_layer(X, W, A, normalise=True))
    assert out1.shape == (N, out_dim)
    assert jnp.allclose(out1, ref_norm, atol=5e-3, rtol=5e-3), "mismatch (normalise, bf16)"

    # 2) normalised, full-f32 path (weighted-adjacency fallback; tighter tolerance).
    out2 = jax.block_until_ready(
        message_layer(X, W, A, normalise=True, cast_adjacency_to_bf16=False))
    assert jnp.allclose(out2, ref_norm, atol=1e-4, rtol=1e-4), "mismatch (normalise, f32)"

    # 3) un-normalised path (same fused kernel, no ones column / no divide).
    out3 = jax.block_until_ready(message_layer(X, W, A, normalise=False))
    assert jnp.allclose(out3, ref_raw, atol=5e-3, rtol=5e-3), "mismatch (no normalise)"

    print("KERNEL_OK")
</pallas_src>

<mosaic_0001>
module attributes {stable_mosaic.version = 11 : i64} {
  func.func @_message_kernel(%arg0: i32, %arg1: i32, %arg2: memref<128x9xbf16, #tpu.memory_space<vmem>>, %arg3: memref<16x128xbf16, #tpu.memory_space<vmem>>, %arg4: memref<16x8xf32, #tpu.memory_space<vmem>>, %arg5: memref<16x9xf32, #tpu.memory_space<vmem>>) attributes {dimension_semantics = [#tpu.dimension_semantics<parallel>, #tpu.dimension_semantics<arbitrary>], iteration_bounds = array<i64: 1, 1>, scalar_prefetch = 0 : i64, scratch_operands = 1 : i64, tpu.core_type = #tpu.core_type<tc>, window_params = [{transform_indices = @transform_0, window_bounds = array<i64: 128, 9>}, {transform_indices = @transform_1, window_bounds = array<i64: 16, 128>}, {transform_indices = @transform_2, window_bounds = array<i64: 16, 8>}]} {
    %c0_i32 = arith.constant 0 : i32
    %0 = arith.cmpi eq, %arg1, %c0_i32 : i32
    %1 = arith.extui %0 : i1 to i32
    %c0_i32_0 = arith.constant 0 : i32
    %2 = arith.cmpi ne, %1, %c0_i32_0 : i32
    scf.if %2 {
      %cst_10 = arith.constant 0.000000e+00 : f32
      %12 = vector.broadcast %cst_10 : f32 to vector<16x9xf32>
      %c0_11 = arith.constant 0 : index
      %c0_12 = arith.constant 0 : index
      %13 = vector.load %arg5[%c0_11, %c0_12] : memref<16x9xf32, #tpu.memory_space<vmem>>, vector<16x9xf32>
      tpu.vector_store %arg5[%c0_11, %c0_12], %12 {strides = array<i32>} : memref<16x9xf32, #tpu.memory_space<vmem>>, vector<16x9xf32>,
    } else {
    }
    %c0 = arith.constant 0 : index
    %c0_1 = arith.constant 0 : index
    %3 = vector.load %arg5[%c0, %c0_1] : memref<16x9xf32, #tpu.memory_space<vmem>>, vector<16x9xf32>
    %c0_2 = arith.constant 0 : index
    %c0_3 = arith.constant 0 : index
    %4 = vector.load %arg3[%c0_2, %c0_3] : memref<16x128xbf16, #tpu.memory_space<vmem>>, vector<16x128xbf16>
    %c0_4 = arith.constant 0 : index
    %c0_5 = arith.constant 0 : index
    %5 = vector.load %arg2[%c0_4, %c0_5] : memref<128x9xbf16, #tpu.memory_space<vmem>>, vector<128x9xbf16>
    %cst = arith.constant dense<0.000000e+00> : vector<16x9xf32>
    %6 = tpu.matmul %4, %5, %cst {dimension_numbers = #tpu.dot_dimension_numbers<[1], [0], [0], [1], [0, 0, 1, 1], [], []>} : vector<16x128xbf16>, vector<128x9xbf16>, vector<16x9xf32> -> vector<16x9xf32>
    %7 = arith.addf %3, %6 : vector<16x9xf32>
    %c0_6 = arith.constant 0 : index
    %c0_7 = arith.constant 0 : index
    %8 = vector.load %arg5[%c0_6, %c0_7] : memref<16x9xf32, #tpu.memory_space<vmem>>, vector<16x9xf32>
    tpu.vector_store %arg5[%c0_6, %c0_7], %7 {strides = array<i32>} : memref<16x9xf32, #tpu.memory_space<vmem>>, vector<16x9xf32>,
    %c0_i32_8 = arith.constant 0 : i32
    %9 = arith.cmpi eq, %arg1, %c0_i32_8 : i32
    %10 = arith.extui %9 : i1 to i32
    %c0_i32_9 = arith.constant 0 : i32
    %11 = arith.cmpi ne, %10, %c0_i32_9 : i32
    scf.if %11 {
      %c0_10 = arith.constant 0 : index
      %c0_11 = arith.constant 0 : index
      %12 = vector.load %arg5[%c0_10, %c0_11] : memref<16x9xf32, #tpu.memory_space<vmem>>, vector<16x9xf32>
      %13 = vector.extract_strided_slice %12 {offsets = [0, 0], sizes = [16, 8], strides = [1, 1]} : vector<16x9xf32> to vector<16x8xf32>
      %14 = vector.extract_strided_slice %12 {offsets = [0, 8], sizes = [16, 1], strides = [1, 1]} : vector<16x9xf32> to vector<16x1xf32>
      %cst_12 = arith.constant 1.000000e-30 : f32
      %15 = vector.broadcast %cst_12 : f32 to vector<16x1xf32>
      %16 = arith.addf %14, %15 : vector<16x1xf32>
      %17 = vector.broadcast %16 : vector<16x1xf32> to vector<16x8xf32>
      %18 = arith.divf %13, %17 : vector<16x8xf32>
      %c0_13 = arith.constant 0 : index
      %c0_14 = arith.constant 0 : index
      %19 = vector.load %arg4[%c0_13, %c0_14] : memref<16x8xf32, #tpu.memory_space<vmem>>, vector<16x8xf32>
      tpu.vector_store %arg4[%c0_13, %c0_14], %18 {strides = array<i32>} : memref<16x8xf32, #tpu.memory_space<vmem>>, vector<16x8xf32>,
    } else {
    }
    return
  }
  func.func @transform_0(%arg0: i32, %arg1: i32) -> (i32, i32) {
    %c0_i32 = arith.constant 0 : i32
    %c0_i32_0 = arith.constant 0 : i32
    return %arg1, %c0_i32 : i32, i32
  }
  func.func @transform_1(%arg0: i32, %arg1: i32) -> (i32, i32) {
    %c0_i32 = arith.constant 0 : i32
    return %arg0, %arg1 : i32, i32
  }
  func.func @transform_2(%arg0: i32, %arg1: i32) -> (i32, i32) {
    %c0_i32 = arith.constant 0 : i32
    %c0_i32_0 = arith.constant 0 : i32
    return %arg0, %c0_i32 : i32, i32
  }
}

</mosaic_0001>

<bundles_post_ra>
// kernel: tpu_custom_call.1
= control target key start
LH: loop header
LB: loop body
LE: loop exit
PB: predicated region body
PF: predicated region fallthrough
CT: control target
= control target key end

     0   :  { %vm15_vm0 = vcmask 72704   ;;  %v217_v2 = vmov 0.0   ;;  %v218_v10 = vmov 8   ;;  %vm158_vm5 = vcmask 64512   ;;  %s273_s0 = inlined_call_operand.vmem [shape: bf16[128,9], index: 0, kind: input, shape index: {}]   ;;  %s274_s1 = inlined_call_operand.vmem [shape: bf16[16,128], index: 1, kind: input, shape index: {}]   ;;  %s275_s2 = inlined_call_operand.vmem [shape: f32[16,8], index: 2, kind: output, shape index: {}]  }
   0x1   :  { %v209_v0 = vld [vmem:[%s273_s0 + $0x38] sm:$0xff]  ;;  %v208_v1 = vld [vmem:[%s273_s0 + $0x30] sm:$0xff]  ;;  %16 = vst.msk [vmem:[#allocation2] sm:$0xff] %vm15_vm0, %v217_v2  ;;  %v207_v3 = vld [vmem:[%s273_s0 + $0x28] sm:$0xff]  ;;  %212 = vset.pattern.permute.xlu0 %v218_v10 }
   0x2   :  { %92 = vmatpush.bf16.msra.mxu0 %v209_v0  ;;  %17 = vst.msk [vmem:[#allocation2 + $0x8] sm:$0xff] %vm15_vm0, %v217_v2  ;;  %v206_v4 = vld [vmem:[%s273_s0 + $0x20] sm:$0xff]  ;;  %v205_v5 = vld [vmem:[%s273_s0 + $0x18] sm:$0xff]  ;;  %v204_v6 = vld [vmem:[%s273_s0 + $0x10] sm:$0xff] }
   0x3   :  { %v203_v7 = vld [vmem:[%s273_s0 + $0x8] sm:$0xff]  ;;  %v202_v8 = vld [vmem:[%s273_s0] sm:$0xff] }
   0x4   :  { %v201_v9 = vld [vmem:[%s274_s1] sm:$0xff] }
   0x6   :  { %93 = vmatpush.bf16.msra.mxu0 %v208_v1 }
   0x8   :  { %v18_v11 = vld [vmem:[#allocation2] sm:$0xff] }
   0x9   :  { %v19_v14 = vld [vmem:[#allocation2 + $0x8] sm:$0xff] }
   0xa   :  { %94 = vmatpush.bf16.msra.mxu0 %v207_v3 }
   0xe   :  { %95 = vmatpush.bf16.msra.mxu0 %v206_v4 }
  0x12   :  { %96 = vmatpush.bf16.msra.mxu0 %v205_v5 }
  0x16   :  { %97 = vmatpush.bf16.msra.mxu0 %v204_v6 }
  0x1a   :  { %98 = vmatpush.bf16.msra.mxu0 %v203_v7 }
  0x1e   :  { %99 = vmatpush.bf16.msra.mxu0 %v202_v8 }
  0x21   :  { %100 = vmatmul.bf16.vlgmr.msra.gmra.mxu0 %v201_v9 }
  0x9e   :  { %v101_v12 = vpop.f32.mrf.mxu0 }
  0x9f   :  { %v106_v13 = vadd.f32 %v101_v12, %v18_v11 }
  0xa1   :  { %109 = vst.msk [vmem:[#allocation2] sm:$0xff] %vm15_vm0, %v106_v13 }
  0xa6   :  { %v103_v15 = vpop.f32.mrf.mxu0 }
  0xa7   :  { %v107_v16 = vadd.f32 %v103_v15, %v19_v14 }
  0xa8   :  { %v114_v17 = vld [vmem:[#allocation2] sm:$0xff] }
  0xa9   :  { %110 = vst.msk [vmem:[#allocation2 + $0x8] sm:$0xff] %vm15_vm0, %v107_v16  ;;  %v116_v18 = vadd.f32 1e-30, %v114_v17 }
  0xab   :  { %120 = vperm.xlu0 %212, %v116_v18  }
  0xb0   :  { %v115_v19 = vld [vmem:[#allocation2 + $0x8] sm:$0xff] }
  0xb1   :  { %v117_v20 = vadd.f32 1e-30, %v115_v19 }
  0xb3   :  { %125 = vperm.xlu0 %212, %v117_v20  }
 0x11d   :  { %v121_v21 = vpop.permute.xlu0 %120 }
 0x11e   :  { %213 = vrcp.f32 %v121_v21  ;;  %v139_v26 = vand.u32 2147483648, %v121_v21  ;;  %v137_v28 = vand.u32 2147483647, %v121_v21  ;;  %vm133_vm2 = vweird.f32 %v121_v21 }
 0x120   :  { %v140_v31 = vor.u32 1.1754944e-38, %v139_v26  ;;  %vm138_vm4 = vcmp.eq.f32.partialorder %v137_v28, 8.507059e+37 }
 0x124   :  { %v214_v22 = vpop.eup %213 }
 0x125   :  { %v129_v23 = vmul.f32 %v214_v22, %v121_v21  ;;  %v126_v24 = vpop.permute.xlu0 %125  ;;  %vm134_vm1 = vweird.f32 %v214_v22 }
 0x126   :  { %215 = vrcp.f32 %v126_v24  ;;  %vm135_vm3 = vmor %vm133_vm2, %vm134_vm1  ;;  %v154_v37 = vand.u32 2147483648, %v126_v24  ;;  %v152_v39 = vand.u32 2147483647, %v126_v24  ;;  %vm148_vm7 = vweird.f32 %v126_v24 }
 0x127   :  { %v130_v25 = vsub.f32 1.0, %v129_v23 }
 0x128   :  { %v155_v41 = vor.u32 1.1754944e-38, %v154_v37  ;;  %vm153_vm9 = vcmp.eq.f32.partialorder %v152_v39, 8.507059e+37 }
 0x129   :  { %v131_v27 = vmul.f32 %v214_v22, %v130_v25 }
 0x12b   :  { %v132_v29 = vadd.f32 %v214_v22, %v131_v27 }
 0x12c   :  { %v216_v30 = vpop.eup %215 }
 0x12d   :  { %v136_v32 = vsel %vm135_vm3, %v214_v22, %v132_v29  ;;  %v144_v33 = vmul.f32 %v216_v30, %v126_v24  ;;  %vm149_vm6 = vweird.f32 %v216_v30 }
 0x12e   :  { %v141_v34 = vsel %vm138_vm4, %v140_v31, %v136_v32  ;;  %vm150_vm8 = vmor %vm148_vm7, %vm149_vm6 }
 0x12f   :  { %v142_v35 = vmul.f32 %v141_v34, %v114_v17  ;;  %v145_v36 = vsub.f32 1.0, %v144_v33 }
 0x131   :  { %159 = vst.msk [vmem:[%s275_s2] sm:$0xff] %vm158_vm5, %v142_v35  ;;  %v146_v38 = vmul.f32 %v216_v30, %v145_v36 }
 0x133   :  { %v147_v40 = vadd.f32 %v216_v30, %v146_v38 }
 0x135   :  { %v151_v42 = vsel %vm150_vm8, %v216_v30, %v147_v40 }
 0x136   :  { %v156_v43 = vsel %vm153_vm9, %v155_v41, %v151_v42 }
 0x137   :  { %v157_v44 = vmul.f32 %v156_v43, %v115_v19 }
 0x139   :  { %160 = vst.msk [vmem:[%s275_s2 + $0x8] sm:$0xff] %vm158_vm5, %v157_v44 }

</bundles_post_ra>
